<compile_context>
chip_gen: v6e
topology: v6e:2x2x1
jax: 0.10.0
libtpu: 0.0.40
codegen_flags: <defaults>
</compile_context>

<pallas_src>
import functools

import jax
import jax.numpy as jnp
from jax.experimental import pallas as pl
from jax.experimental.pallas import tpu as pltpu

# Conv2d(5, 16, kernel_size=5, stride=2, padding=0)  (PyTorch's (5,) -> 5x5)
IN_C, OUT_C, KH, KW, STRIDE = 5, 16, 5, 5, 2
C_PAD = 8                      # channels padded 5 -> 8 (aligned sublane blocks)
K_PAD = KH * KW * C_PAD        # 200 contraction rows = 25 blocks of 8
MW = 128                       # lane width of patch / output tile (dense)


def _conv_leaky_kernel(x_ref, w_ref, b_ref, o_ref, p_ref, *, H2, W2):
    """One batch element: fused im2col + matmul + bias + leaky-where.

    x_ref : [1, 2, C_PAD, L_PAD]  parity-split, lane-dense input:
                                  x_ref[0, p, c, q*H2*W2 + a*W2 + b] = x[c, 2a+p, 2b+q]
    w_ref : [OC, K_PAD]           weight, k = (ki*KW + kj)*C_PAD + c, zero-padded
    b_ref : [OC, 1]               bias
    o_ref : [1, OC, MW]           output tile (lane m = oy*W2 + ox, junk cols dropped later)
    p_ref : VMEM scratch [K_PAD, MW]   im2col patch matrix
    """
    # Two hoisted loads (one per row-parity); each is a [C_PAD, L_PAD] slab.
    rows = (x_ref[0, 0, :, :], x_ref[0, 1, :, :])

    # Build the patch matrix: ONE full-width, aligned [C_PAD, MW] store per tap.
    for ki in range(KH):
        p, a0 = ki % 2, ki // 2
        row = rows[p]
        for kj in range(KW):
            q, b0 = kj % 2, kj // 2
            s = q * (H2 * W2) + a0 * W2 + b0            # static lane shift
            kidx = ki * KW + kj
            p_ref[kidx * C_PAD:(kidx + 1) * C_PAD, :] = row[:, s:s + MW]

    # Single MXU matmul: [OC, 200] @ [200, 128] -> [OC, 128]
    acc = jnp.dot(w_ref[...], p_ref[...], preferred_element_type=jnp.float32)
    acc = acc + b_ref[...]                               # bias broadcast over lanes
    # v3 = where(v1 > 0, v1, v1 * 0.1)
    o_ref[0] = jnp.where(acc > 0.0, acc, acc * 0.1).astype(o_ref.dtype)


@jax.jit
def model_forward(x, weight, bias):
    """x: [N, 5, H, W] f32; weight: [16, 5, 5, 5]; bias: [16] -> [N, 16, OH, OW]."""
    N, C, H, W = x.shape
    assert C == IN_C
    OH = (H - KH) // STRIDE + 1
    OW = (W - KW) // STRIDE + 1

    # Pad spatial dims to even so the stride-2 parity split is a pure reshape.
    # (The padded row/col is never read by any valid conv window.)
    if H % 2:
        x = jnp.pad(x, ((0, 0), (0, 0), (0, 1), (0, 0)))
    if W % 2:
        x = jnp.pad(x, ((0, 0), (0, 0), (0, 0), (0, 1)))
    H2, W2 = x.shape[2] // 2, x.shape[3] // 2

    # This kernel assembles the whole per-sample output in one 128-lane tile.
    assert (OH - 1) * W2 + OW <= MW, "spatial output too large for single-tile kernel"
    # TODO(synk): tile over output rows for spatial sizes where OH*W2 > 128.

    # Parity-split, lane-dense input:
    #   xq[n, p, c, q*H2*W2 + a*W2 + b] = x[n, c, 2a+p, 2b+q]
    xq = (x.reshape(N, C, H2, 2, W2, 2)
            .transpose(0, 3, 1, 5, 2, 4)
            .reshape(N, 2, C, 2 * H2 * W2))
    xq = jnp.pad(xq, ((0, 0), (0, 0), (0, C_PAD - C), (0, 0)))
    # Pad lanes (with zeros) so every shifted 128-wide slab slice stays in bounds.
    s_max = H2 * W2 + (KH // 2) * W2 + (KW // 2)
    L_PAD = ((s_max + MW + 127) // 128) * 128
    xq = jnp.pad(xq, ((0, 0), (0, 0), (0, 0), (0, L_PAD - 2 * H2 * W2)))

    # Weight: [OC, C, KH, KW] -> [OC, (ki*KW+kj)*C_PAD + c], channel-padded with zeros.
    w2 = weight.transpose(0, 2, 3, 1).reshape(OUT_C, KH * KW, IN_C)
    w2 = jnp.pad(w2, ((0, 0), (0, 0), (0, C_PAD - IN_C))).reshape(OUT_C, K_PAD)
    b2 = bias.reshape(OUT_C, 1)

    kernel = functools.partial(_conv_leaky_kernel, H2=H2, W2=W2)

    cost = pl.CostEstimate(
        flops=2 * N * MW * K_PAD * OUT_C,
        transcendentals=0,
        bytes_accessed=(xq.size + w2.size + b2.size + N * OUT_C * MW) * 4,
    )

    out = pl.pallas_call(
        kernel,
        out_shape=jax.ShapeDtypeStruct((N, OUT_C, MW), jnp.float32),
        grid=(N,),
        in_specs=[
            pl.BlockSpec((1, 2, C_PAD, L_PAD), lambda n: (n, 0, 0, 0)),
            pl.BlockSpec((OUT_C, K_PAD), lambda n: (0, 0)),
            pl.BlockSpec((OUT_C, 1), lambda n: (0, 0)),
        ],
        out_specs=pl.BlockSpec((1, OUT_C, MW), lambda n: (n, 0, 0)),
        scratch_shapes=[pltpu.VMEM((K_PAD, MW), jnp.float32)],
        compiler_params=pltpu.CompilerParams(
            dimension_semantics=("parallel",)),
        cost_estimate=cost,
    )(xq, w2, b2)

    # lane m = oy*W2 + ox; keep oy < OH, ox < OW, drop junk lanes (cheap slice).
    return out[:, :, : OH * W2].reshape(N, OUT_C, OH, W2)[:, :, :, :OW]


if __name__ == "__main__":
    key = jax.random.PRNGKey(0)
    kx, kw, kb = jax.random.split(key, 3)

    # Small shapes consistent with the module: N=2, C=5, H=W=16
    x = jax.random.normal(kx, (2, IN_C, 16, 16), dtype=jnp.float32)

    # Deterministic PyTorch-style init: U(-1/sqrt(fan_in), 1/sqrt(fan_in))
    fan_in = IN_C * KH * KW
    bound = 1.0 / jnp.sqrt(jnp.float32(fan_in))
    weight = jax.random.uniform(kw, (OUT_C, IN_C, KH, KW), jnp.float32,
                                minval=-bound, maxval=bound)
    bias = jax.random.uniform(kb, (OUT_C,), jnp.float32,
                              minval=-bound, maxval=bound)

    out = jax.block_until_ready(model_forward(x, weight, bias))

    # Sanity check against a plain-JAX reference (conv + leaky where)
    ref = jax.lax.conv_general_dilated(
        x, weight, window_strides=(STRIDE, STRIDE), padding="VALID",
        dimension_numbers=("NCHW", "OIHW", "NCHW"))
    ref = ref + bias.reshape(1, OUT_C, 1, 1)
    ref = jnp.where(ref > 0, ref, ref * 0.1)
    assert out.shape == (2, OUT_C, 6, 6)
    assert jnp.allclose(out, ref, atol=1e-4, rtol=1e-4)

    print("KERNEL_OK")
</pallas_src>

<mosaic_0001>
module attributes {stable_mosaic.version = 11 : i64} {
  func.func @_conv_leaky_kernel(%arg0: i32, %arg1: memref<1x2x8x256xf32, #tpu.memory_space<vmem>>, %arg2: memref<16x200xf32, #tpu.memory_space<vmem>>, %arg3: memref<16x1xf32, #tpu.memory_space<vmem>>, %arg4: memref<1x16x128xf32, #tpu.memory_space<vmem>>, %arg5: memref<200x128xf32, #tpu.memory_space<vmem>>) attributes {dimension_semantics = [#tpu.dimension_semantics<parallel>], iteration_bounds = array<i64: 2>, scalar_prefetch = 0 : i64, scratch_operands = 1 : i64, tpu.core_type = #tpu.core_type<tc>, window_params = [{transform_indices = @transform_0, window_bounds = array<i64: 1, 2, 8, 256>}, {pipeline_mode = #tpu.pipeline_mode<synchronous>, transform_indices = @transform_1, window_bounds = array<i64: 16, 200>}, {pipeline_mode = #tpu.pipeline_mode<synchronous>, transform_indices = @transform_2, window_bounds = array<i64: 16, 1>}, {transform_indices = @transform_3, window_bounds = array<i64: 1, 16, 128>}]} {
    %c0 = arith.constant 0 : index
    %c0_0 = arith.constant 0 : index
    %c0_1 = arith.constant 0 : index
    %c0_2 = arith.constant 0 : index
    %0 = vector.load %arg1[%c0, %c0_0, %c0_1, %c0_2] : memref<1x2x8x256xf32, #tpu.memory_space<vmem>>, vector<1x1x8x256xf32>
    %1 = vector.shape_cast %0 : vector<1x1x8x256xf32> to vector<8x256xf32>
    %c0_3 = arith.constant 0 : index
    %c1 = arith.constant 1 : index
    %c0_4 = arith.constant 0 : index
    %c0_5 = arith.constant 0 : index
    %2 = vector.load %arg1[%c0_3, %c1, %c0_4, %c0_5] : memref<1x2x8x256xf32, #tpu.memory_space<vmem>>, vector<1x1x8x256xf32>
    %3 = vector.shape_cast %2 : vector<1x1x8x256xf32> to vector<8x256xf32>
    %4 = vector.extract_strided_slice %1 {offsets = [0, 0], sizes = [8, 128], strides = [1, 1]} : vector<8x256xf32> to vector<8x128xf32>
    %c0_6 = arith.constant 0 : index
    %c0_7 = arith.constant 0 : index
    %5 = vector.load %arg5[%c0_6, %c0_7] : memref<200x128xf32, #tpu.memory_space<vmem>>, vector<8x128xf32>
    tpu.vector_store %arg5[%c0_6, %c0_7], %4 {strides = array<i32>} : memref<200x128xf32, #tpu.memory_space<vmem>>, vector<8x128xf32>,
    %6 = vector.extract_strided_slice %1 {offsets = [0, 64], sizes = [8, 128], strides = [1, 1]} : vector<8x256xf32> to vector<8x128xf32>
    %c8 = arith.constant 8 : index
    %c0_8 = arith.constant 0 : index
    %7 = vector.load %arg5[%c8, %c0_8] : memref<200x128xf32, #tpu.memory_space<vmem>>, vector<8x128xf32>
    tpu.vector_store %arg5[%c8, %c0_8], %6 {strides = array<i32>} : memref<200x128xf32, #tpu.memory_space<vmem>>, vector<8x128xf32>,
    %8 = vector.extract_strided_slice %1 {offsets = [0, 1], sizes = [8, 128], strides = [1, 1]} : vector<8x256xf32> to vector<8x128xf32>
    %c16 = arith.constant 16 : index
    %c0_9 = arith.constant 0 : index
    %9 = vector.load %arg5[%c16, %c0_9] : memref<200x128xf32, #tpu.memory_space<vmem>>, vector<8x128xf32>
    tpu.vector_store %arg5[%c16, %c0_9], %8 {strides = array<i32>} : memref<200x128xf32, #tpu.memory_space<vmem>>, vector<8x128xf32>,
    %10 = vector.extract_strided_slice %1 {offsets = [0, 65], sizes = [8, 128], strides = [1, 1]} : vector<8x256xf32> to vector<8x128xf32>
    %c24 = arith.constant 24 : index
    %c0_10 = arith.constant 0 : index
    %11 = vector.load %arg5[%c24, %c0_10] : memref<200x128xf32, #tpu.memory_space<vmem>>, vector<8x128xf32>
    tpu.vector_store %arg5[%c24, %c0_10], %10 {strides = array<i32>} : memref<200x128xf32, #tpu.memory_space<vmem>>, vector<8x128xf32>,
    %12 = vector.extract_strided_slice %1 {offsets = [0, 2], sizes = [8, 128], strides = [1, 1]} : vector<8x256xf32> to vector<8x128xf32>
    %c32 = arith.constant 32 : index
    %c0_11 = arith.constant 0 : index
    %13 = vector.load %arg5[%c32, %c0_11] : memref<200x128xf32, #tpu.memory_space<vmem>>, vector<8x128xf32>
    tpu.vector_store %arg5[%c32, %c0_11], %12 {strides = array<i32>} : memref<200x128xf32, #tpu.memory_space<vmem>>, vector<8x128xf32>,
    %14 = vector.extract_strided_slice %3 {offsets = [0, 0], sizes = [8, 128], strides = [1, 1]} : vector<8x256xf32> to vector<8x128xf32>
    %c40 = arith.constant 40 : index
    %c0_12 = arith.constant 0 : index
    %15 = vector.load %arg5[%c40, %c0_12] : memref<200x128xf32, #tpu.memory_space<vmem>>, vector<8x128xf32>
    tpu.vector_store %arg5[%c40, %c0_12], %14 {strides = array<i32>} : memref<200x128xf32, #tpu.memory_space<vmem>>, vector<8x128xf32>,
    %16 = vector.extract_strided_slice %3 {offsets = [0, 64], sizes = [8, 128], strides = [1, 1]} : vector<8x256xf32> to vector<8x128xf32>
    %c48 = arith.constant 48 : index
    %c0_13 = arith.constant 0 : index
    %17 = vector.load %arg5[%c48, %c0_13] : memref<200x128xf32, #tpu.memory_space<vmem>>, vector<8x128xf32>
    tpu.vector_store %arg5[%c48, %c0_13], %16 {strides = array<i32>} : memref<200x128xf32, #tpu.memory_space<vmem>>, vector<8x128xf32>,
    %18 = vector.extract_strided_slice %3 {offsets = [0, 1], sizes = [8, 128], strides = [1, 1]} : vector<8x256xf32> to vector<8x128xf32>
    %c56 = arith.constant 56 : index
    %c0_14 = arith.constant 0 : index
    %19 = vector.load %arg5[%c56, %c0_14] : memref<200x128xf32, #tpu.memory_space<vmem>>, vector<8x128xf32>
    tpu.vector_store %arg5[%c56, %c0_14], %18 {strides = array<i32>} : memref<200x128xf32, #tpu.memory_space<vmem>>, vector<8x128xf32>,
    %20 = vector.extract_strided_slice %3 {offsets = [0, 65], sizes = [8, 128], strides = [1, 1]} : vector<8x256xf32> to vector<8x128xf32>
    %c64 = arith.constant 64 : index
    %c0_15 = arith.constant 0 : index
    %21 = vector.load %arg5[%c64, %c0_15] : memref<200x128xf32, #tpu.memory_space<vmem>>, vector<8x128xf32>
    tpu.vector_store %arg5[%c64, %c0_15], %20 {strides = array<i32>} : memref<200x128xf32, #tpu.memory_space<vmem>>, vector<8x128xf32>,
    %22 = vector.extract_strided_slice %3 {offsets = [0, 2], sizes = [8, 128], strides = [1, 1]} : vector<8x256xf32> to vector<8x128xf32>
    %c72 = arith.constant 72 : index
    %c0_16 = arith.constant 0 : index
    %23 = vector.load %arg5[%c72, %c0_16] : memref<200x128xf32, #tpu.memory_space<vmem>>, vector<8x128xf32>
    tpu.vector_store %arg5[%c72, %c0_16], %22 {strides = array<i32>} : memref<200x128xf32, #tpu.memory_space<vmem>>, vector<8x128xf32>,
    %24 = vector.extract_strided_slice %1 {offsets = [0, 8], sizes = [8, 128], strides = [1, 1]} : vector<8x256xf32> to vector<8x128xf32>
    %c80 = arith.constant 80 : index
    %c0_17 = arith.constant 0 : index
    %25 = vector.load %arg5[%c80, %c0_17] : memref<200x128xf32, #tpu.memory_space<vmem>>, vector<8x128xf32>
    tpu.vector_store %arg5[%c80, %c0_17], %24 {strides = array<i32>} : memref<200x128xf32, #tpu.memory_space<vmem>>, vector<8x128xf32>,
    %26 = vector.extract_strided_slice %1 {offsets = [0, 72], sizes = [8, 128], strides = [1, 1]} : vector<8x256xf32> to vector<8x128xf32>
    %c88 = arith.constant 88 : index
    %c0_18 = arith.constant 0 : index
    %27 = vector.load %arg5[%c88, %c0_18] : memref<200x128xf32, #tpu.memory_space<vmem>>, vector<8x128xf32>
    tpu.vector_store %arg5[%c88, %c0_18], %26 {strides = array<i32>} : memref<200x128xf32, #tpu.memory_space<vmem>>, vector<8x128xf32>,
    %28 = vector.extract_strided_slice %1 {offsets = [0, 9], sizes = [8, 128], strides = [1, 1]} : vector<8x256xf32> to vector<8x128xf32>
    %c96 = arith.constant 96 : index
    %c0_19 = arith.constant 0 : index
    %29 = vector.load %arg5[%c96, %c0_19] : memref<200x128xf32, #tpu.memory_space<vmem>>, vector<8x128xf32>
    tpu.vector_store %arg5[%c96, %c0_19], %28 {strides = array<i32>} : memref<200x128xf32, #tpu.memory_space<vmem>>, vector<8x128xf32>,
    %30 = vector.extract_strided_slice %1 {offsets = [0, 73], sizes = [8, 128], strides = [1, 1]} : vector<8x256xf32> to vector<8x128xf32>
    %c104 = arith.constant 104 : index
    %c0_20 = arith.constant 0 : index
    %31 = vector.load %arg5[%c104, %c0_20] : memref<200x128xf32, #tpu.memory_space<vmem>>, vector<8x128xf32>
    tpu.vector_store %arg5[%c104, %c0_20], %30 {strides = array<i32>} : memref<200x128xf32, #tpu.memory_space<vmem>>, vector<8x128xf32>,
    %32 = vector.extract_strided_slice %1 {offsets = [0, 10], sizes = [8, 128], strides = [1, 1]} : vector<8x256xf32> to vector<8x128xf32>
    %c112 = arith.constant 112 : index
    %c0_21 = arith.constant 0 : index
    %33 = vector.load %arg5[%c112, %c0_21] : memref<200x128xf32, #tpu.memory_space<vmem>>, vector<8x128xf32>
    tpu.vector_store %arg5[%c112, %c0_21], %32 {strides = array<i32>} : memref<200x128xf32, #tpu.memory_space<vmem>>, vector<8x128xf32>,
    %34 = vector.extract_strided_slice %3 {offsets = [0, 8], sizes = [8, 128], strides = [1, 1]} : vector<8x256xf32> to vector<8x128xf32>
    %c120 = arith.constant 120 : index
    %c0_22 = arith.constant 0 : index
    %35 = vector.load %arg5[%c120, %c0_22] : memref<200x128xf32, #tpu.memory_space<vmem>>, vector<8x128xf32>
    tpu.vector_store %arg5[%c120, %c0_22], %34 {strides = array<i32>} : memref<200x128xf32, #tpu.memory_space<vmem>>, vector<8x128xf32>,
    %36 = vector.extract_strided_slice %3 {offsets = [0, 72], sizes = [8, 128], strides = [1, 1]} : vector<8x256xf32> to vector<8x128xf32>
    %c128 = arith.constant 128 : index
    %c0_23 = arith.constant 0 : index
    %37 = vector.load %arg5[%c128, %c0_23] : memref<200x128xf32, #tpu.memory_space<vmem>>, vector<8x128xf32>
    tpu.vector_store %arg5[%c128, %c0_23], %36 {strides = array<i32>} : memref<200x128xf32, #tpu.memory_space<vmem>>, vector<8x128xf32>,
    %38 = vector.extract_strided_slice %3 {offsets = [0, 9], sizes = [8, 128], strides = [1, 1]} : vector<8x256xf32> to vector<8x128xf32>
    %c136 = arith.constant 136 : index
    %c0_24 = arith.constant 0 : index
    %39 = vector.load %arg5[%c136, %c0_24] : memref<200x128xf32, #tpu.memory_space<vmem>>, vector<8x128xf32>
    tpu.vector_store %arg5[%c136, %c0_24], %38 {strides = array<i32>} : memref<200x128xf32, #tpu.memory_space<vmem>>, vector<8x128xf32>,
    %40 = vector.extract_strided_slice %3 {offsets = [0, 73], sizes = [8, 128], strides = [1, 1]} : vector<8x256xf32> to vector<8x128xf32>
    %c144 = arith.constant 144 : index
    %c0_25 = arith.constant 0 : index
    %41 = vector.load %arg5[%c144, %c0_25] : memref<200x128xf32, #tpu.memory_space<vmem>>, vector<8x128xf32>
    tpu.vector_store %arg5[%c144, %c0_25], %40 {strides = array<i32>} : memref<200x128xf32, #tpu.memory_space<vmem>>, vector<8x128xf32>,
    %42 = vector.extract_strided_slice %3 {offsets = [0, 10], sizes = [8, 128], strides = [1, 1]} : vector<8x256xf32> to vector<8x128xf32>
    %c152 = arith.constant 152 : index
    %c0_26 = arith.constant 0 : index
    %43 = vector.load %arg5[%c152, %c0_26] : memref<200x128xf32, #tpu.memory_space<vmem>>, vector<8x128xf32>
    tpu.vector_store %arg5[%c152, %c0_26], %42 {strides = array<i32>} : memref<200x128xf32, #tpu.memory_space<vmem>>, vector<8x128xf32>,
    %44 = vector.extract_strided_slice %1 {offsets = [0, 16], sizes = [8, 128], strides = [1, 1]} : vector<8x256xf32> to vector<8x128xf32>
    %c160 = arith.constant 160 : index
    %c0_27 = arith.constant 0 : index
    %45 = vector.load %arg5[%c160, %c0_27] : memref<200x128xf32, #tpu.memory_space<vmem>>, vector<8x128xf32>
    tpu.vector_store %arg5[%c160, %c0_27], %44 {strides = array<i32>} : memref<200x128xf32, #tpu.memory_space<vmem>>, vector<8x128xf32>,
    %46 = vector.extract_strided_slice %1 {offsets = [0, 80], sizes = [8, 128], strides = [1, 1]} : vector<8x256xf32> to vector<8x128xf32>
    %c168 = arith.constant 168 : index
    %c0_28 = arith.constant 0 : index
    %47 = vector.load %arg5[%c168, %c0_28] : memref<200x128xf32, #tpu.memory_space<vmem>>, vector<8x128xf32>
    tpu.vector_store %arg5[%c168, %c0_28], %46 {strides = array<i32>} : memref<200x128xf32, #tpu.memory_space<vmem>>, vector<8x128xf32>,
    %48 = vector.extract_strided_slice %1 {offsets = [0, 17], sizes = [8, 128], strides = [1, 1]} : vector<8x256xf32> to vector<8x128xf32>
    %c176 = arith.constant 176 : index
    %c0_29 = arith.constant 0 : index
    %49 = vector.load %arg5[%c176, %c0_29] : memref<200x128xf32, #tpu.memory_space<vmem>>, vector<8x128xf32>
    tpu.vector_store %arg5[%c176, %c0_29], %48 {strides = array<i32>} : memref<200x128xf32, #tpu.memory_space<vmem>>, vector<8x128xf32>,
    %50 = vector.extract_strided_slice %1 {offsets = [0, 81], sizes = [8, 128], strides = [1, 1]} : vector<8x256xf32> to vector<8x128xf32>
    %c184 = arith.constant 184 : index
    %c0_30 = arith.constant 0 : index
    %51 = vector.load %arg5[%c184, %c0_30] : memref<200x128xf32, #tpu.memory_space<vmem>>, vector<8x128xf32>
    tpu.vector_store %arg5[%c184, %c0_30], %50 {strides = array<i32>} : memref<200x128xf32, #tpu.memory_space<vmem>>, vector<8x128xf32>,
    %52 = vector.extract_strided_slice %1 {offsets = [0, 18], sizes = [8, 128], strides = [1, 1]} : vector<8x256xf32> to vector<8x128xf32>
    %c192 = arith.constant 192 : index
    %c0_31 = arith.constant 0 : index
    %53 = vector.load %arg5[%c192, %c0_31] : memref<200x128xf32, #tpu.memory_space<vmem>>, vector<8x128xf32>
    tpu.vector_store %arg5[%c192, %c0_31], %52 {strides = array<i32>} : memref<200x128xf32, #tpu.memory_space<vmem>>, vector<8x128xf32>,
    %c0_32 = arith.constant 0 : index
    %c0_33 = arith.constant 0 : index
    %54 = vector.load %arg2[%c0_32, %c0_33] : memref<16x200xf32, #tpu.memory_space<vmem>>, vector<16x200xf32>
    %c0_34 = arith.constant 0 : index
    %c0_35 = arith.constant 0 : index
    %55 = vector.load %arg5[%c0_34, %c0_35] : memref<200x128xf32, #tpu.memory_space<vmem>>, vector<200x128xf32>
    %cst = arith.constant dense<0.000000e+00> : vector<16x128xf32>
    %56 = tpu.matmul %54, %55, %cst {dimension_numbers = #tpu.dot_dimension_numbers<[1], [0], [0], [1], [0, 0, 1, 1], [], []>} : vector<16x200xf32>, vector<200x128xf32>, vector<16x128xf32> -> vector<16x128xf32>
    %c0_36 = arith.constant 0 : index
    %c0_37 = arith.constant 0 : index
    %57 = vector.load %arg3[%c0_36, %c0_37] : memref<16x1xf32, #tpu.memory_space<vmem>>, vector<16x1xf32>
    %58 = vector.broadcast %57 : vector<16x1xf32> to vector<16x128xf32>
    %59 = arith.addf %56, %58 : vector<16x128xf32>
    %cst_38 = arith.constant 0.000000e+00 : f32
    %60 = vector.broadcast %cst_38 : f32 to vector<16x128xf32>
    %61 = arith.cmpf ogt, %59, %60 : vector<16x128xf32>
    %cst_39 = arith.constant 1.000000e-01 : f32
    %62 = vector.broadcast %cst_39 : f32 to vector<16x128xf32>
    %63 = arith.mulf %59, %62 : vector<16x128xf32>
    %64 = arith.select %61, %59, %63 : vector<16x128xi1>, vector<16x128xf32>
    %c0_40 = arith.constant 0 : index
    %c0_41 = arith.constant 0 : index
    %c0_42 = arith.constant 0 : index
    %65 = vector.load %arg4[%c0_40, %c0_41, %c0_42] : memref<1x16x128xf32, #tpu.memory_space<vmem>>, vector<1x16x128xf32>
    %66 = vector.shape_cast %65 : vector<1x16x128xf32> to vector<16x128xf32>
    %67 = vector.shape_cast %64 : vector<16x128xf32> to vector<1x16x128xf32>
    tpu.vector_store %arg4[%c0_40, %c0_41, %c0_42], %67 {strides = array<i32>} : memref<1x16x128xf32, #tpu.memory_space<vmem>>, vector<1x16x128xf32>,
    return
  }
  func.func @transform_0(%arg0: i32) -> (i32, i32, i32, i32) {
    %c0_i32 = arith.constant 0 : i32
    %c0_i32_0 = arith.constant 0 : i32
    %c0_i32_1 = arith.constant 0 : i32
    %c0_i32_2 = arith.constant 0 : i32
    return %arg0, %c0_i32, %c0_i32_0, %c0_i32_1 : i32, i32, i32, i32
  }
  func.func @transform_1(%arg0: i32) -> (i32, i32) {
    %c0_i32 = arith.constant 0 : i32
    %c0_i32_0 = arith.constant 0 : i32
    %c0_i32_1 = arith.constant 0 : i32
    return %c0_i32, %c0_i32_0 : i32, i32
  }
  func.func @transform_2(%arg0: i32) -> (i32, i32) {
    %c0_i32 = arith.constant 0 : i32
    %c0_i32_0 = arith.constant 0 : i32
    %c0_i32_1 = arith.constant 0 : i32
    return %c0_i32, %c0_i32_0 : i32, i32
  }
  func.func @transform_3(%arg0: i32) -> (i32, i32, i32) {
    %c0_i32 = arith.constant 0 : i32
    %c0_i32_0 = arith.constant 0 : i32
    %c0_i32_1 = arith.constant 0 : i32
    return %arg0, %c0_i32, %c0_i32_0 : i32, i32, i32
  }
}

</mosaic_0001>

<bundles_post_ra>
// kernel: model_forward.1
= control target key start
LH: loop header
LB: loop body
LE: loop exit
PB: predicated region body
PF: predicated region fallthrough
CT: control target
= control target key end

     0   :  { %s680_s12 = smov 0   ;;  %s845_s0 = inlined_call_operand.vmem [shape: f32[2,2,8,256], index: 0, kind: input, shape index: {}]   ;;  %s846_s1 = inlined_call_operand.vmem [shape: f32[16,200], index: 1, kind: input, shape index: {}]   ;;  %s847_s2 = inlined_call_operand.vmem [shape: f32[16,1], index: 2, kind: input, shape index: {}]   ;;  %s848_s3 = inlined_call_operand.vmem [shape: f32[2,16,128], index: 3, kind: output, shape index: {}]  }
   0x1 LB: > { %s543_s13 = sadd.s32 4294967295, %s642_s12   ;;  %p547_p0 = scmp.ge.s32.totalorder %s642_s12, 1  ;;  %s642_s12 = sphi %s680_s12, %s13_s12  }
   0x2   : > { %p137_p1 = scmp.lt.s32.totalorder %s642_s12, 3 }
   0x4   : > { %p138_p2 = pnand %p547_p0, %p137_p1 }
   0x5   : > { %p161_p3 = scmp.lt.s32.totalorder (!%p138_p2), %s543_s13, 1  ;;  %s645_s18 = smov (!%p138_p2), 120  }
   0x6   : > { %141 = sbr.rel (%p138_p2) target bundleno = 419 (0x1a3), region = 32  ;;  %s646_s19 = smov (!%p138_p2), 118  }
   0x7   : > { %s647_s20 = smov (!%p138_p2), 55   ;;  %s648_s21 = smov (!%p138_p2), 119  }
   0x8   : > { %s649_s22 = smov (!%p138_p2), 56   ;;  %s650_s23 = smov (!%p138_p2), 126  }
   0x9   : > { %s651_s24 = smov (!%p138_p2), 63   ;;  %s652_s25 = smov (!%p138_p2), 127  }
   0xa   : > { %s653_s26 = smov (!%p138_p2), 64   ;;  %s654_s27 = smov (!%p138_p2), 110  }
   0xb   : > { %v644_v0 = vmov 0.0   ;;  %s850_s13 = smov (!%p161_p3, %s543_s13), 1  ;;  %s655_s28 = smov 47   ;;  %v358_v5 = vld [vmem:[%s846_s1 + $0x8] sm:$0xff]  ;;  %vm398_vm0 = vcmask 588800   ;;  %v360_v6 = vld [vmem:[%s846_s1 + $0x18] sm:$0xff] }
   0xc   : > { %405 = vmatprep.subr.mxu0 %v644_v0  ;;  %560 = vmatprep.subr.mxu1 %v644_v0  ;;  %s558_s14 = sshll.u32 %s850_s13, 5  ;;  %s656_s29 = smov 111   ;;  %v659_v7 = vmov 0   ;;  %v386_v8 = vld [vmem:[%s847_s2] sm:$0xff]  ;;  %v387_v9 = vld [vmem:[%s847_s2 + $0x8] sm:$0xff]  ;;  %vm246_vm1 = vcmask 982016  }
   0xd   : > { %s165_s17 = scalar_lea.vmem %s845_s0, %s558_s14  ;;  %s657_s30 = smov 48   ;;  %554 = vmatprep.mubr.msk.f32.mxu0 %vm398_vm0, %v358_v5  ;;  %555 = vmatprep.mubr.msk.f32.mxu1 %vm398_vm0, %v360_v6  ;;  %vm278_vm2 = vcmask 965632   ;;  %vm270_vm3 = vcmask 449536   ;;  %vm262_vm4 = vcmask 973824   ;;  %vm254_vm5 = vcmask 457728  }
   0xe   : > { %v696_v1 = vld [vmem:[%s165_s17 + $0x10] sm:$0xff]  ;;  %v698_v2 = vld [vmem:[%s165_s17] sm:$0xff]  ;;  %v172_v3 = vld [vmem:[%s165_s17 + $0x8] sm:$0xff]  ;;  %s658_s4 = smov 112   ;;  %635 = vset.pattern.permute.xlu1 %v659_v7  ;;  %634 = vset.pattern.permute.xlu0 %v659_v7  ;;  %vm207_vm6 = vcmask 1031168   ;;  %vm199_vm7 = vcmask 515072  }
   0xf   : > { %282 = vrot.lane.b32.xlu0 %v696_v1, %s645_s18  ;;  %274 = vrot.lane.b32.xlu1 %v698_v2, %s646_s19  ;;  %v703_v4 = vld [vmem:[%s165_s17 + $0x18] sm:$0xff]  ;;  %vm191_vm8 = vcmask 1039360   ;;  %vm183_vm9 = vcmask 523264   ;;  %vm353_vm10 = vcmask 900096   ;;  %vm345_vm11 = vcmask 384000  }
  0x10   : > { %vm337_vm12 = vcmask 908288   ;;  %vm329_vm13 = vcmask 392192   ;;  %vm321_vm14 = vcmask 916480  }
  0x13   : > { %284 = vrot.lane.b32.xlu0 %v703_v4, %s645_s18  ;;  %276 = vrot.lane.b32.xlu1 %v172_v3, %s646_s19 }
  0x17   : > { %266 = vrot.lane.b32.xlu0 %v698_v2, %s647_s20  ;;  %268 = vrot.lane.b32.xlu1 %v172_v3, %s647_s20 }
  0x1b   : > { %258 = vrot.lane.b32.xlu0 %v698_v2, %s648_s21  ;;  %260 = vrot.lane.b32.xlu1 %v172_v3, %s648_s21 }
  0x1f   : > { %250 = vrot.lane.b32.xlu0 %v698_v2, %s649_s22  ;;  %252 = vrot.lane.b32.xlu1 %v172_v3, %s649_s22 }
  0x23   : > { %242 = vrot.lane.b32.xlu0 %v698_v2, %s645_s18  ;;  %244 = vrot.lane.b32.xlu1 %v172_v3, %s645_s18 }
  0x27   : > { %235 = vrot.lane.b32.xlu0 %v696_v1, %s650_s23  ;;  %237 = vrot.lane.b32.xlu1 %v703_v4, %s650_s23 }
  0x2b   : > { %228 = vrot.lane.b32.xlu0 %v696_v1, %s651_s24  ;;  %230 = vrot.lane.b32.xlu1 %v703_v4, %s651_s24 }
  0x2f   : > { %221 = vrot.lane.b32.xlu0 %v696_v1, %s652_s25  ;;  %223 = vrot.lane.b32.xlu1 %v703_v4, %s652_s25 }
  0x33   : > { %214 = vrot.lane.b32.xlu0 %v696_v1, %s653_s26  ;;  %216 = vrot.lane.b32.xlu1 %v703_v4, %s653_s26 }
  0x37   : > { %203 = vrot.lane.b32.xlu0 %v698_v2, %s650_s23  ;;  %205 = vrot.lane.b32.xlu1 %v172_v3, %s650_s23 }
  0x3b   : > { %195 = vrot.lane.b32.xlu0 %v698_v2, %s651_s24  ;;  %197 = vrot.lane.b32.xlu1 %v172_v3, %s651_s24 }
  0x3f   : > { %187 = vrot.lane.b32.xlu0 %v698_v2, %s652_s25  ;;  %189 = vrot.lane.b32.xlu1 %v172_v3, %s652_s25 }
  0x43   : > { %179 = vrot.lane.b32.xlu0 %v698_v2, %s653_s26  ;;  %181 = vrot.lane.b32.xlu1 %v172_v3, %s653_s26 }
  0x47   : > { %349 = vrot.lane.b32.xlu0 %v698_v2, %s654_s27  ;;  %351 = vrot.lane.b32.xlu1 %v172_v3, %s654_s27 }
  0x4b   : > { %341 = vrot.lane.b32.xlu0 %v698_v2, %s655_s28  ;;  %343 = vrot.lane.b32.xlu1 %v172_v3, %s655_s28 }
  0x4f   : > { %333 = vrot.lane.b32.xlu0 %v698_v2, %s656_s29  ;;  %335 = vrot.lane.b32.xlu1 %v172_v3, %s656_s29 }
  0x53   : > { %325 = vrot.lane.b32.xlu0 %v698_v2, %s657_s30  ;;  %327 = vrot.lane.b32.xlu1 %v172_v3, %s657_s30 }
  0x57   : > { %317 = vrot.lane.b32.xlu0 %v698_v2, %s658_s4  ;;  %319 = vrot.lane.b32.xlu1 %v172_v3, %s658_s4 }
  0x5b   : > { %310 = vrot.lane.b32.xlu0 %v696_v1, %s646_s19  ;;  %312 = vrot.lane.b32.xlu1 %v703_v4, %s646_s19  ;;  %s559_s19 = sshll.u32 %s850_s13, 4 }
  0x5f   : > { %303 = vrot.lane.b32.xlu0 %v696_v1, %s647_s20  ;;  %305 = vrot.lane.b32.xlu1 %v703_v4, %s647_s20 }
  0x63   : > { %296 = vrot.lane.b32.xlu0 %v696_v1, %s648_s21  ;;  %298 = vrot.lane.b32.xlu1 %v703_v4, %s648_s21 }
  0x67   : > { %289 = vrot.lane.b32.xlu0 %v696_v1, %s649_s22  ;;  %291 = vrot.lane.b32.xlu1 %v703_v4, %s649_s22  ;;  %s170_s22 = scalar_lea.vmem %s848_s3, %s559_s19 }
  0x6b   : > { %390 = vperm.xlu0 %634, %v386_v8   ;;  %395 = vperm.xlu1 %635, %v387_v9  }
  0x81   : > { %v283_v10 = vpop.permute.xlu0 %282  ;;  %v275_v11 = vpop.permute.xlu1 %274 }
  0x85   : > { %v285_v12 = vpop.permute.xlu0 %284  ;;  %v277_v13 = vpop.permute.xlu1 %276 }
  0x86   : > { %v286_v14 = vsel %vm246_vm1, %v283_v10, %v285_v12  ;;  %v279_v15 = vsel %vm278_vm2, %v275_v11, %v277_v13 }
  0x87   : > { %406 = vmatpush1.msra.mxu0 %v286_v14  ;;  %585 = vmatpush1.msra.mxu1 %v286_v14 }
  0x88   : > { %407 = vmatprep.subr.mxu0 %v644_v0  ;;  %561 = vmatprep.subr.mxu1 %v644_v0 }
  0x89   : > { %v267_v16 = vpop.permute.xlu0 %266  ;;  %408 = vmatpush1.msra.mxu0 %v279_v15  ;;  %586 = vmatpush1.msra.mxu1 %v279_v15  ;;  %v269_v17 = vpop.permute.xlu1 %268  ;;  %v357_v15 = vld [vmem:[%s846_s1] sm:$0xff] }
  0x8a   : > { %409 = vmatprep.subr.mxu0 %v644_v0  ;;  %562 = vmatprep.subr.mxu1 %v644_v0  ;;  %v271_v18 = vsel %vm270_vm3, %v267_v16, %v269_v17  ;;  %v359_v16 = vld [vmem:[%s846_s1 + $0x10] sm:$0xff] }
  0x8b   : > { %410 = vmatpush1.msra.mxu0 %v271_v18  ;;  %587 = vmatpush1.msra.mxu1 %v271_v18 }
  0x8c   : > { %411 = vmatprep.subr.mxu0 %v644_v0  ;;  %563 = vmatprep.subr.mxu1 %v644_v0 }
  0x8d   : > { %v259_v19 = vpop.permute.xlu0 %258  ;;  %v261_v20 = vpop.permute.xlu1 %260 }
  0x8e   : > { %v263_v21 = vsel %vm262_vm4, %v259_v19, %v261_v20 }
  0x8f   : > { %412 = vmatpush1.msra.mxu0 %v263_v21  ;;  %588 = vmatpush1.msra.mxu1 %v263_v21 }
  0x90   : > { %413 = vmatprep.subr.mxu0 %v644_v0  ;;  %564 = vmatprep.subr.mxu1 %v644_v0 }
  0x91   : > { %v251_v22 = vpop.permute.xlu0 %250  ;;  %v253_v23 = vpop.permute.xlu1 %252 }
  0x92   : > { %v255_v24 = vsel %vm254_vm5, %v251_v22, %v253_v23 }
  0x93   : > { %414 = vmatpush1.msra.mxu0 %v255_v24  ;;  %589 = vmatpush1.msra.mxu1 %v255_v24 }
  0x94   : > { %415 = vmatprep.subr.mxu0 %v644_v0  ;;  %565 = vmatprep.subr.mxu1 %v644_v0 }
  0x95   : > { %v243_v25 = vpop.permute.xlu0 %242  ;;  %v245_v26 = vpop.permute.xlu1 %244 }
  0x96   : > { %v247_v27 = vsel %vm246_vm1, %v243_v25, %v245_v26 }
  0x97   : > { %416 = vmatpush1.msra.mxu0 %v247_v27  ;;  %590 = vmatpush1.msra.mxu1 %v247_v27 }
  0x98   : > { %417 = vmatprep.subr.mxu0 %v644_v0  ;;  %566 = vmatprep.subr.mxu1 %v644_v0 }
  0x99   : > { %v236_v28 = vpop.permute.xlu0 %235  ;;  %v238_v29 = vpop.permute.xlu1 %237 }
  0x9a   : > { %v239_v30 = vsel %vm207_vm6, %v236_v28, %v238_v29 }
  0x9b   : > { %418 = vmatpush1.msra.mxu0 %v239_v30  ;;  %591 = vmatpush1.msra.mxu1 %v239_v30 }
  0x9c   : > { %419 = vmatprep.subr.mxu0 %v644_v0  ;;  %567 = vmatprep.subr.mxu1 %v644_v0 }
  0x9d   : > { %v229_v31 = vpop.permute.xlu0 %228  ;;  %v231_v32 = vpop.permute.xlu1 %230 }
  0x9e   : > { %v232_v33 = vsel %vm199_vm7, %v229_v31, %v231_v32 }
  0x9f   : > { %420 = vmatpush1.msra.mxu0 %v232_v33  ;;  %592 = vmatpush1.msra.mxu1 %v232_v33 }
  0xa0   : > { %421 = vmatprep.subr.mxu0 %v644_v0  ;;  %568 = vmatprep.subr.mxu1 %v644_v0 }
  0xa1   : > { %v222_v34 = vpop.permute.xlu0 %221  ;;  %v224_v35 = vpop.permute.xlu1 %223 }
  0xa2   : > { %v225_v36 = vsel %vm191_vm8, %v222_v34, %v224_v35 }
  0xa3   : > { %422 = vmatpush1.msra.mxu0 %v225_v36  ;;  %593 = vmatpush1.msra.mxu1 %v225_v36 }
  0xa4   : > { %423 = vmatprep.subr.mxu0 %v644_v0  ;;  %569 = vmatprep.subr.mxu1 %v644_v0 }
  0xa5   : > { %v215_v37 = vpop.permute.xlu0 %214  ;;  %v217_v38 = vpop.permute.xlu1 %216 }
  0xa6   : > { %v218_v39 = vsel %vm183_vm9, %v215_v37, %v217_v38 }
  0xa7   : > { %424 = vmatpush1.msra.mxu0 %v218_v39  ;;  %594 = vmatpush1.msra.mxu1 %v218_v39 }
  0xa8   : > { %425 = vmatprep.subr.mxu0 %v644_v0  ;;  %570 = vmatprep.subr.mxu1 %v644_v0 }
  0xa9   : > { %v204_v40 = vpop.permute.xlu0 %203  ;;  %426 = vmatpush1.msra.mxu0 %v696_v1  ;;  %595 = vmatpush1.msra.mxu1 %v696_v1  ;;  %v206_v41 = vpop.permute.xlu1 %205 }
  0xaa   : > { %427 = vmatprep.subr.mxu0 %v644_v0  ;;  %571 = vmatprep.subr.mxu1 %v644_v0  ;;  %v208_v42 = vsel %vm207_vm6, %v204_v40, %v206_v41 }
  0xab   : > { %428 = vmatpush1.msra.mxu0 %v208_v42  ;;  %596 = vmatpush1.msra.mxu1 %v208_v42 }
  0xac   : > { %429 = vmatprep.subr.mxu0 %v644_v0  ;;  %572 = vmatprep.subr.mxu1 %v644_v0 }
  0xad   : > { %v196_v43 = vpop.permute.xlu0 %195  ;;  %v198_v44 = vpop.permute.xlu1 %197 }
  0xae   : > { %v200_v45 = vsel %vm199_vm7, %v196_v43, %v198_v44 }
  0xaf   : > { %430 = vmatpush1.msra.mxu0 %v200_v45  ;;  %597 = vmatpush1.msra.mxu1 %v200_v45 }
  0xb0   : > { %431 = vmatprep.subr.mxu0 %v644_v0  ;;  %573 = vmatprep.subr.mxu1 %v644_v0 }
  0xb1   : > { %v188_v46 = vpop.permute.xlu0 %187  ;;  %v190_v47 = vpop.permute.xlu1 %189 }
  0xb2   : > { %v192_v48 = vsel %vm191_vm8, %v188_v46, %v190_v47 }
  0xb3   : > { %432 = vmatpush1.msra.mxu0 %v192_v48  ;;  %598 = vmatpush1.msra.mxu1 %v192_v48 }
  0xb4   : > { %433 = vmatprep.subr.mxu0 %v644_v0  ;;  %574 = vmatprep.subr.mxu1 %v644_v0 }
  0xb5   : > { %v180_v49 = vpop.permute.xlu0 %179  ;;  %v182_v50 = vpop.permute.xlu1 %181 }
  0xb6   : > { %v184_v51 = vsel %vm183_vm9, %v180_v49, %v182_v50 }
  0xb7   : > { %434 = vmatpush1.msra.mxu0 %v184_v51  ;;  %599 = vmatpush1.msra.mxu1 %v184_v51 }
  0xb8   : > { %435 = vmatprep.subr.mxu0 %v644_v0  ;;  %575 = vmatprep.subr.mxu1 %v644_v0 }
  0xb9   : > { %v350_v52 = vpop.permute.xlu0 %349  ;;  %436 = vmatpush1.msra.mxu0 %v698_v2  ;;  %600 = vmatpush1.msra.mxu1 %v698_v2  ;;  %v352_v53 = vpop.permute.xlu1 %351 }
  0xba   : > { %451 = vmatprep.subr.mxu0 %v644_v0  ;;  %576 = vmatprep.subr.mxu1 %v644_v0  ;;  %v354_v54 = vsel %vm353_vm10, %v350_v52, %v352_v53 }
  0xbb   : > { %452 = vmatpush2.msra.mxu0 %v354_v54  ;;  %601 = vmatpush2.msra.mxu1 %v354_v54 }
  0xbc   : > { %453 = vmatprep.subr.mxu0 %v644_v0  ;;  %577 = vmatprep.subr.mxu1 %v644_v0 }
  0xbd   : > { %v342_v55 = vpop.permute.xlu0 %341  ;;  %v344_v56 = vpop.permute.xlu1 %343 }
  0xbe   : > { %v346_v57 = vsel %vm345_vm11, %v342_v55, %v344_v56 }
  0xbf   : > { %454 = vmatpush2.msra.mxu0 %v346_v57  ;;  %602 = vmatpush2.msra.mxu1 %v346_v57 }
  0xc0   : > { %455 = vmatprep.subr.mxu0 %v644_v0  ;;  %578 = vmatprep.subr.mxu1 %v644_v0 }
  0xc1   : > { %v334_v58 = vpop.permute.xlu0 %333  ;;  %v336_v59 = vpop.permute.xlu1 %335 }
  0xc2   : > { %v338_v60 = vsel %vm337_vm12, %v334_v58, %v336_v59 }
  0xc3   : > { %456 = vmatpush2.msra.mxu0 %v338_v60  ;;  %603 = vmatpush2.msra.mxu1 %v338_v60 }
  0xc4   : > { %457 = vmatprep.subr.mxu0 %v644_v0  ;;  %579 = vmatprep.subr.mxu1 %v644_v0 }
  0xc5   : > { %v326_v61 = vpop.permute.xlu0 %325  ;;  %v328_v62 = vpop.permute.xlu1 %327 }
  0xc6   : > { %v330_v63 = vsel %vm329_vm13, %v326_v61, %v328_v62 }
  0xc7   : > { %458 = vmatpush2.msra.mxu0 %v330_v63  ;;  %604 = vmatpush2.msra.mxu1 %v330_v63 }
  0xc8   : > { %459 = vmatprep.subr.mxu0 %v644_v0  ;;  %580 = vmatprep.subr.mxu1 %v644_v0 }
  0xc9   : > { %v318_v1 = vpop.permute.xlu0 %317  ;;  %v320_v2 = vpop.permute.xlu1 %319 }
  0xca   : > { %v322_v3 = vsel %vm321_vm14, %v318_v1, %v320_v2 }
  0xcb   : > { %460 = vmatpush2.msra.mxu0 %v322_v3  ;;  %605 = vmatpush2.msra.mxu1 %v322_v3 }
  0xcc   : > { %461 = vmatprep.subr.mxu0 %v644_v0  ;;  %581 = vmatprep.subr.mxu1 %v644_v0 }
  0xcd   : > { %v311_v4 = vpop.permute.xlu0 %310  ;;  %v313_v5 = vpop.permute.xlu1 %312 }
  0xce   : > { %v314_v6 = vsel %vm278_vm2, %v311_v4, %v313_v5 }
  0xcf   : > { %462 = vmatpush2.msra.mxu0 %v314_v6  ;;  %606 = vmatpush2.msra.mxu1 %v314_v6 }
  0xd0   : > { %463 = vmatprep.subr.mxu0 %v644_v0  ;;  %582 = vmatprep.subr.mxu1 %v644_v0 }
  0xd1   : > { %v304_v7 = vpop.permute.xlu0 %303  ;;  %v306_v8 = vpop.permute.xlu1 %305 }
  0xd2   : > { %v307_v9 = vsel %vm270_vm3, %v304_v7, %v306_v8 }
  0xd3   : > { %464 = vmatpush2.msra.mxu0 %v307_v9  ;;  %607 = vmatpush2.msra.mxu1 %v307_v9 }
  0xd4   : > { %465 = vmatprep.subr.mxu0 %v644_v0  ;;  %583 = vmatprep.subr.mxu1 %v644_v0 }
  0xd5   : > { %v297_v10 = vpop.permute.xlu0 %296  ;;  %v299_v11 = vpop.permute.xlu1 %298 }
  0xd6   : > { %v300_v12 = vsel %vm262_vm4, %v297_v10, %v299_v11 }
  0xd7   : > { %466 = vmatpush2.msra.mxu0 %v300_v12  ;;  %608 = vmatpush2.msra.mxu1 %v300_v12 }
  0xd8   : > { %467 = vmatprep.subr.mxu0 %v644_v0  ;;  %584 = vmatprep.subr.mxu1 %v644_v0 }
  0xd9   : > { %v290_v13 = vpop.permute.xlu0 %289  ;;  %v292_v14 = vpop.permute.xlu1 %291 }
  0xda   : > { %v293_v17 = vsel %vm254_vm5, %v290_v13, %v292_v14 }
  0xdb   : > { %468 = vmatpush2.msra.mxu0 %v293_v17  ;;  %609 = vmatpush2.msra.mxu1 %v293_v17 }
  0xdc   : > { %470 = vmatmul.mubr.f32.vlgmr.msra.gmra.mxu0 %v357_v15  ;;  %475 = vmatmul.mubr.f32.vlgmr.msra.gmra.mxu1 %v359_v16 }
  0xe6   : > { %v391_v18 = vpop.permute.xlu0 %390  ;;  %v396_v19 = vpop.permute.xlu1 %395 }
 0x19c   : > { %v471_v0 = vpop.f32.mrf.mxu0  ;;  %v476_v20 = vpop.f32.mrf.mxu1 }
 0x19d   : > { %v472_v21 = vadd.f32 %v471_v0, %v391_v18  ;;  %v477_v22 = vadd.f32 %v476_v20, %v396_v19 }
 0x19e   : > { %v473_v23 = vpop.f32.mrf.mxu0  ;;  %v478_v24 = vpop.f32.mrf.mxu1 }
 0x19f   : > { %vm480_vm15 = vcmp.gt.f32.partialorder %v472_v21, 0.0  ;;  %v482_v25 = vmul.f32 0.1, %v472_v21  ;;  %vm481_vm0 = vcmp.gt.f32.partialorder %v477_v22, 0.0  ;;  %v483_v26 = vmul.f32 0.1, %v477_v22 }
 0x1a1   : > { %v484_v27 = vsel %vm480_vm15, %v472_v21, %v482_v25  ;;  %v485_v28 = vsel %vm481_vm0, %v477_v22, %v483_v26 }
 0x1a2   : > { %486 = vst [vmem:[%s170_s22] sm:$0xff] %v484_v27  ;;  %487 = vst [vmem:[%s170_s22 + $0x8] sm:$0xff] %v485_v28 }
 0x1a3 PF: > { %s13_s12 = sadd.s32 1, %s642_s12  }
 0x1a4   : > { %p10_p4 = scmp.ge.s32.totalorder %s13_s12, 4  }
 0x1a6   :  { %12 = sbr.rel (!%p10_p4) target bundleno = 1 (0x1), region = 63 }

</bundles_post_ra>
